<compile_context>
chip_gen: v7x
topology: tpu7x:2x2x1
jax: 0.10.0
libtpu: 0.0.40
codegen_flags: <defaults>
</compile_context>

<pallas_src>
import functools

import jax
import jax.numpy as jnp
from jax import lax
from jax.experimental import pallas as pl
from jax.experimental.pallas import tpu as pltpu


def _round_up(x, m):
    return ((x + m - 1) // m) * m


def _default_vmem_limit_bytes():
    """Chip-aware scoped-VMEM limit (leave headroom for Mosaic internal scratch)."""
    try:
        kind = jax.devices()[0].device_kind.lower()
    except Exception:  # pragma: no cover - defensive
        kind = ""
    if "v5" in kind or "v6" in kind:
        return 100 * 1024 * 1024   # 128 MiB physical on v5e/v6e
    return 56 * 1024 * 1024        # 64 MiB physical on v7x (and safe default)


def _mlp_kernel(x_ref, w1_ref, b1_ref, w2_ref, b2_ref, o_ref, acc_ref):
    """One (batch-tile, out-tile, hidden-tile) step of the fused MLP.

    Layouts (weights pre-transposed + padded once at init):
      x_ref  : [bb, in]   compute_dtype     w1_ref : [in, bh]  compute_dtype
      b1_ref : [1, bh]    f32               w2_ref : [bh, bn]  compute_dtype
      b2_ref : [1, bn]    f32               o_ref  : [bb, bn]
      acc_ref: [bb, bn]   f32 accumulator, resident across the hidden grid axis.
    """
    k = pl.program_id(2)

    @pl.when(k == 0)
    def _():
        acc_ref[...] = jnp.zeros_like(acc_ref)

    # linear1: [bb, in] @ [in, bh] -> f32 [bb, bh]  (natural contraction, no transposes)
    h = jnp.dot(x_ref[...], w1_ref[...], preferred_element_type=jnp.float32)
    h = h + b1_ref[...]

    # Exact erf GELU in f32 (matches PyTorch nn.GELU() default; f32 epilogue so
    # v5e's VALU isn't asked to do bf16 elementwise).
    # TODO(synk): tanh-approx GELU would move this VALU polynomial to the EUP
    #             slot if fidelity tolerances allow.
    h = 0.5 * h * (1.0 + lax.erf(h * 0.7071067811865476))

    # TODO(synk): dropout is identity in eval mode; training-mode dropout
    # (pltpu.prng_random_bits masking) omitted since PyTorch RNG can't be matched.

    # linear2: [bb, bh] @ [bh, bn] accumulated over hidden tiles.
    acc_ref[...] += jnp.dot(
        h.astype(w2_ref.dtype), w2_ref[...], preferred_element_type=jnp.float32
    )

    @pl.when(k == pl.num_programs(2) - 1)
    def _():
        o_ref[...] = (acc_ref[...] + b2_ref[...]).astype(o_ref.dtype)


def prepare_params(w1, b1, w2, b2, *, compute_dtype=jnp.bfloat16):
    """One-time weight prep (do this at init, NOT per forward call).

    w1: [hidden, in]  b1: [hidden]  w2: [out, hidden]  b2: [out]  (PyTorch layout)
    Returns (w1t, b1p, w2t, b2p, out_dim) with
      w1t: [in, H_pad] compute_dtype, w2t: [H_pad, out_pad] compute_dtype,
      b1p: [1, H_pad] f32,            b2p: [1, out_pad] f32.
    Zero padding is semantics-preserving: gelu(0)=0 and zero W2 rows/cols add 0.
    """
    hidden, _ = w1.shape
    out_dim = w2.shape[0]
    h_pad = _round_up(hidden, 128)
    out_pad = _round_up(out_dim, 128)   # lane-dense output -> unmasked stores

    w1t = jnp.pad(w1.T, ((0, 0), (0, h_pad - hidden))).astype(compute_dtype)
    b1p = jnp.pad(b1, (0, h_pad - hidden)).astype(jnp.float32).reshape(1, h_pad)
    w2t = jnp.pad(
        w2.T, ((0, h_pad - hidden), (0, out_pad - out_dim))
    ).astype(compute_dtype)
    b2p = jnp.pad(b2, (0, out_pad - out_dim)).astype(jnp.float32).reshape(1, out_pad)
    return w1t, b1p, w2t, b2p, out_dim


@functools.partial(jax.jit, static_argnames=("out_dim",))
def mlp_forward(x, w1t, b1, w2t, b2, *, out_dim):
    """x: [B, in]; w1t: [in, H_pad]; b1: [1, H_pad]; w2t: [H_pad, out_pad]; b2: [1, out_pad]."""
    B, in_dim = x.shape
    h_pad = w1t.shape[1]
    out_pad = w2t.shape[1]
    compute_dtype = w1t.dtype
    out_dtype = jnp.float32

    # Tile sizes.  bf16 packs 16 rows per sublane pair -> batch tile aligned to
    # 16 (8 for f32).  Large batch tile minimizes weight re-streaming across
    # batch tiles; 512x512 bf16 hidden/out tiles keep the double-buffered
    # working set ~20-30 MiB even for in_dim ~ 8K (fits v7x's 64 MiB budget).
    row_align = 16 if compute_dtype == jnp.bfloat16 else 8
    block_b = min(512, _round_up(B, row_align))
    block_h = min(512, h_pad)
    block_n = min(512, out_pad)
    # TODO(synk): in_dim is kept whole per tile; extremely wide inputs (>~16K)
    # would need an additional K tiling axis on the first matmul.

    b_pad = _round_up(B, block_b)
    x_p = jnp.pad(x, ((0, b_pad - B), (0, 0))).astype(compute_dtype)

    grid = (b_pad // block_b, out_pad // block_n, h_pad // block_h)

    flops = 2 * B * in_dim * h_pad + 2 * B * h_pad * out_pad
    bytes_accessed = (
        x.size * x_p.dtype.itemsize
        + w1t.size * w1t.dtype.itemsize
        + w2t.size * w2t.dtype.itemsize
        + (b1.size + b2.size) * 4
        + B * out_pad * 4
    )

    out_p = pl.pallas_call(
        _mlp_kernel,
        out_shape=jax.ShapeDtypeStruct((b_pad, out_pad), out_dtype),
        grid_spec=pltpu.PrefetchScalarGridSpec(
            num_scalar_prefetch=0,
            grid=grid,
            in_specs=[
                pl.BlockSpec((block_b, in_dim), lambda i, j, k: (i, 0)),   # x rows
                pl.BlockSpec((in_dim, block_h), lambda i, j, k: (0, k)),   # W1^T cols
                pl.BlockSpec((1, block_h), lambda i, j, k: (0, k)),        # b1 slice
                pl.BlockSpec((block_h, block_n), lambda i, j, k: (k, j)),  # W2^T tile
                pl.BlockSpec((1, block_n), lambda i, j, k: (0, j)),        # b2 slice
            ],
            out_specs=pl.BlockSpec((block_b, block_n), lambda i, j, k: (i, j)),
            scratch_shapes=[pltpu.VMEM((block_b, block_n), jnp.float32)],
        ),
        compiler_params=pltpu.CompilerParams(
            dimension_semantics=("parallel", "parallel", "arbitrary"),
            vmem_limit_bytes=_default_vmem_limit_bytes(),
        ),
        cost_estimate=pl.CostEstimate(
            flops=flops,
            transcendentals=B * h_pad,
            bytes_accessed=bytes_accessed,
        ),
    )(x_p, w1t, b1, w2t, b2)

    return out_p[:B, :out_dim]


def _reference(x, w1, b1, w2, b2):
    h = x @ w1.T + b1
    h = jax.nn.gelu(h, approximate=False)
    return h @ w2.T + b2


if __name__ == "__main__":
    # Small shapes consistent with the module: batch=8, input=32, hidden=64, output=16.
    batch, input_size, hidden_size, output_size = 8, 32, 64, 16

    key = jax.random.PRNGKey(0)
    kx, k1, k2, k3, k4 = jax.random.split(key, 5)

    x = jax.random.normal(kx, (batch, input_size), dtype=jnp.float32)

    # Deterministic parameter init (uniform, PyTorch-Linear-like scale).
    bound1 = 1.0 / (input_size ** 0.5)
    bound2 = 1.0 / (hidden_size ** 0.5)
    w1 = jax.random.uniform(k1, (hidden_size, input_size), jnp.float32, -bound1, bound1)
    b1 = jax.random.uniform(k2, (hidden_size,), jnp.float32, -bound1, bound1)
    w2 = jax.random.uniform(k3, (output_size, hidden_size), jnp.float32, -bound2, bound2)
    b2 = jax.random.uniform(k4, (output_size,), jnp.float32, -bound2, bound2)

    ref = _reference(x, w1, b1, w2, b2)

    # 1) f32 path: bit-tight check of the kernel structure/math.
    w1t, b1p, w2t, b2p, od = prepare_params(w1, b1, w2, b2, compute_dtype=jnp.float32)
    out_f32 = mlp_forward(x, w1t, b1p, w2t, b2p, out_dim=od)
    jax.block_until_ready(out_f32)
    assert out_f32.shape == (batch, output_size)
    assert jnp.allclose(out_f32, ref, atol=1e-5, rtol=1e-5), "f32 mismatch vs reference"

    # 2) bf16 matmul path (the performance configuration): loose tolerance vs f32.
    w1t, b1p, w2t, b2p, od = prepare_params(w1, b1, w2, b2, compute_dtype=jnp.bfloat16)
    out_bf16 = mlp_forward(x, w1t, b1p, w2t, b2p, out_dim=od)
    jax.block_until_ready(out_bf16)
    assert out_bf16.shape == (batch, output_size)
    assert jnp.allclose(out_bf16, ref, atol=3e-2, rtol=3e-2), "bf16 mismatch vs reference"

    print("KERNEL_OK")
</pallas_src>

<mosaic_0001>
module attributes {stable_mosaic.version = 11 : i64} {
  func.func @_mlp_kernel(%arg0: i32, %arg1: i32, %arg2: i32, %arg3: memref<8x32xf32, #tpu.memory_space<vmem>>, %arg4: memref<32x128xf32, #tpu.memory_space<vmem>>, %arg5: memref<1x128xf32, #tpu.memory_space<vmem>>, %arg6: memref<128x128xf32, #tpu.memory_space<vmem>>, %arg7: memref<1x128xf32, #tpu.memory_space<vmem>>, %arg8: memref<8x128xf32, #tpu.memory_space<vmem>>, %arg9: memref<8x128xf32, #tpu.memory_space<vmem>>) attributes {dimension_semantics = [#tpu.dimension_semantics<parallel>, #tpu.dimension_semantics<parallel>, #tpu.dimension_semantics<arbitrary>], iteration_bounds = array<i64: 1, 1, 1>, scalar_prefetch = 0 : i64, scratch_operands = 1 : i64, tpu.core_type = #tpu.core_type<tc>, window_params = [{transform_indices = @transform_0, window_bounds = array<i64: 8, 32>}, {transform_indices = @transform_1, window_bounds = array<i64: 32, 128>}, {transform_indices = @transform_2, window_bounds = array<i64: 1, 128>}, {transform_indices = @transform_3, window_bounds = array<i64: 128, 128>}, {transform_indices = @transform_4, window_bounds = array<i64: 1, 128>}, {transform_indices = @transform_5, window_bounds = array<i64: 8, 128>}]} {
    %c0_i32 = arith.constant 0 : i32
    %0 = arith.cmpi eq, %arg2, %c0_i32 : i32
    %1 = arith.extui %0 : i1 to i32
    %c0_i32_0 = arith.constant 0 : i32
    %2 = arith.cmpi ne, %1, %c0_i32_0 : i32
    scf.if %2 {
      %cst_18 = arith.constant 0.000000e+00 : f32
      %25 = vector.broadcast %cst_18 : f32 to vector<8x128xf32>
      %c0_19 = arith.constant 0 : index
      %c0_20 = arith.constant 0 : index
      %26 = vector.load %arg9[%c0_19, %c0_20] : memref<8x128xf32, #tpu.memory_space<vmem>>, vector<8x128xf32>
      tpu.vector_store %arg9[%c0_19, %c0_20], %25 {strides = array<i32>} : memref<8x128xf32, #tpu.memory_space<vmem>>, vector<8x128xf32>,
    } else {
    }
    %c0 = arith.constant 0 : index
    %c0_1 = arith.constant 0 : index
    %3 = vector.load %arg3[%c0, %c0_1] : memref<8x32xf32, #tpu.memory_space<vmem>>, vector<8x32xf32>
    %c0_2 = arith.constant 0 : index
    %c0_3 = arith.constant 0 : index
    %4 = vector.load %arg4[%c0_2, %c0_3] : memref<32x128xf32, #tpu.memory_space<vmem>>, vector<32x128xf32>
    %cst = arith.constant dense<0.000000e+00> : vector<8x128xf32>
    %5 = tpu.matmul %3, %4, %cst {dimension_numbers = #tpu.dot_dimension_numbers<[1], [0], [0], [1], [0, 0, 1, 1], [], []>} : vector<8x32xf32>, vector<32x128xf32>, vector<8x128xf32> -> vector<8x128xf32>
    %c0_4 = arith.constant 0 : index
    %c0_5 = arith.constant 0 : index
    %6 = vector.load %arg5[%c0_4, %c0_5] : memref<1x128xf32, #tpu.memory_space<vmem>>, vector<1x128xf32>
    %7 = vector.broadcast %6 : vector<1x128xf32> to vector<8x128xf32>
    %8 = arith.addf %5, %7 : vector<8x128xf32>
    %cst_6 = arith.constant 5.000000e-01 : f32
    %9 = vector.broadcast %cst_6 : f32 to vector<8x128xf32>
    %10 = arith.mulf %9, %8 : vector<8x128xf32>
    %cst_7 = arith.constant 0.707106769 : f32
    %11 = vector.broadcast %cst_7 : f32 to vector<8x128xf32>
    %12 = arith.mulf %8, %11 : vector<8x128xf32>
    %13 = math.erf %12 : vector<8x128xf32>
    %cst_8 = arith.constant 1.000000e+00 : f32
    %14 = vector.broadcast %cst_8 : f32 to vector<8x128xf32>
    %15 = arith.addf %14, %13 : vector<8x128xf32>
    %16 = arith.mulf %10, %15 : vector<8x128xf32>
    %c0_9 = arith.constant 0 : index
    %c0_10 = arith.constant 0 : index
    %17 = vector.load %arg9[%c0_9, %c0_10] : memref<8x128xf32, #tpu.memory_space<vmem>>, vector<8x128xf32>
    %c0_11 = arith.constant 0 : index
    %c0_12 = arith.constant 0 : index
    %18 = vector.load %arg6[%c0_11, %c0_12] : memref<128x128xf32, #tpu.memory_space<vmem>>, vector<128x128xf32>
    %cst_13 = arith.constant dense<0.000000e+00> : vector<8x128xf32>
    %19 = tpu.matmul %16, %18, %cst_13 {dimension_numbers = #tpu.dot_dimension_numbers<[1], [0], [0], [1], [0, 0, 1, 1], [], []>} : vector<8x128xf32>, vector<128x128xf32>, vector<8x128xf32> -> vector<8x128xf32>
    %20 = arith.addf %17, %19 : vector<8x128xf32>
    %c0_14 = arith.constant 0 : index
    %c0_15 = arith.constant 0 : index
    %21 = vector.load %arg9[%c0_14, %c0_15] : memref<8x128xf32, #tpu.memory_space<vmem>>, vector<8x128xf32>
    tpu.vector_store %arg9[%c0_14, %c0_15], %20 {strides = array<i32>} : memref<8x128xf32, #tpu.memory_space<vmem>>, vector<8x128xf32>,
    %c0_i32_16 = arith.constant 0 : i32
    %22 = arith.cmpi eq, %arg2, %c0_i32_16 : i32
    %23 = arith.extui %22 : i1 to i32
    %c0_i32_17 = arith.constant 0 : i32
    %24 = arith.cmpi ne, %23, %c0_i32_17 : i32
    scf.if %24 {
      %c0_18 = arith.constant 0 : index
      %c0_19 = arith.constant 0 : index
      %25 = vector.load %arg9[%c0_18, %c0_19] : memref<8x128xf32, #tpu.memory_space<vmem>>, vector<8x128xf32>
      %c0_20 = arith.constant 0 : index
      %c0_21 = arith.constant 0 : index
      %26 = vector.load %arg7[%c0_20, %c0_21] : memref<1x128xf32, #tpu.memory_space<vmem>>, vector<1x128xf32>
      %27 = vector.broadcast %26 : vector<1x128xf32> to vector<8x128xf32>
      %28 = arith.addf %25, %27 : vector<8x128xf32>
      %c0_22 = arith.constant 0 : index
      %c0_23 = arith.constant 0 : index
      %29 = vector.load %arg8[%c0_22, %c0_23] : memref<8x128xf32, #tpu.memory_space<vmem>>, vector<8x128xf32>
      tpu.vector_store %arg8[%c0_22, %c0_23], %28 {strides = array<i32>} : memref<8x128xf32, #tpu.memory_space<vmem>>, vector<8x128xf32>,
    } else {
    }
    return
  }
  func.func @transform_0(%arg0: i32, %arg1: i32, %arg2: i32) -> (i32, i32) {
    %c0_i32 = arith.constant 0 : i32
    %c0_i32_0 = arith.constant 0 : i32
    return %arg0, %c0_i32 : i32, i32
  }
  func.func @transform_1(%arg0: i32, %arg1: i32, %arg2: i32) -> (i32, i32) {
    %c0_i32 = arith.constant 0 : i32
    %c0_i32_0 = arith.constant 0 : i32
    return %c0_i32, %arg2 : i32, i32
  }
  func.func @transform_2(%arg0: i32, %arg1: i32, %arg2: i32) -> (i32, i32) {
    %c0_i32 = arith.constant 0 : i32
    %c0_i32_0 = arith.constant 0 : i32
    return %c0_i32, %arg2 : i32, i32
  }
  func.func @transform_3(%arg0: i32, %arg1: i32, %arg2: i32) -> (i32, i32) {
    %c0_i32 = arith.constant 0 : i32
    return %arg2, %arg1 : i32, i32
  }
  func.func @transform_4(%arg0: i32, %arg1: i32, %arg2: i32) -> (i32, i32) {
    %c0_i32 = arith.constant 0 : i32
    %c0_i32_0 = arith.constant 0 : i32
    return %c0_i32, %arg1 : i32, i32
  }
  func.func @transform_5(%arg0: i32, %arg1: i32, %arg2: i32) -> (i32, i32) {
    %c0_i32 = arith.constant 0 : i32
    return %arg0, %arg1 : i32, i32
  }
}

</mosaic_0001>

<bundles_post_ra>
// kernel: mlp_forward.1
= control target key start
LH: loop header
LB: loop body
LE: loop exit
PB: predicated region body
PF: predicated region fallthrough
CT: control target
= control target key end

     0   :  { %10 = vsyncpa [#allocation4], 0  ;;  %s579_s0 = inlined_call_operand.hbm [shape: f32[8,32], index: 0, kind: input, shape index: {}]   ;;  %s580_s1 = inlined_call_operand.hbm [shape: f32[32,128], index: 1, kind: input, shape index: {}]   ;;  %s581_s2 = inlined_call_operand.vmem [shape: f32[1,128], index: 2, kind: input, shape index: {}]   ;;  %s582_s3 = inlined_call_operand.hbm [shape: f32[128,128], index: 3, kind: input, shape index: {}]   ;;  %s583_s4 = inlined_call_operand.vmem [shape: f32[1,128], index: 4, kind: input, shape index: {}]   ;;  %s584_s5 = inlined_call_operand.hbm [shape: f32[8,128], index: 5, kind: output, shape index: {}]  }
   0x1   :  { %11 = vsyncpa [#allocation7], 0 }
   0x2   :  { %12 = vsyncpa [#allocation5], 0  ;;  %s480_s18 = smov [#allocation6]   ;;  %s386_s22 = scalar_lea.hbm %s580_s1, 512 }
   0x3   :  { %s28_s19 = sshll.u32 %s480_s18, 4  ;;  %p387_p0 = scmp.ne.s32.totalorder %s580_s1, %s386_s22  ;;  %s29_s19 = int_to_ptr.vmem [resolvable:$true] %s28_s19 }
   0x4   :  { %p390_p1 = scmp.lt.u32.totalorder %s386_s22, %s580_s1 }
   0x6   :  { %p392_p2 = pnand %p390_p1, %p387_p0 }
   0x8   :  { %395 = shalt.err (!%p392_p2)
}
   0x9   :  { %s396_s27 = scalar_lea.vmem %s29_s19, 512  ;;  %p401_p4 = scmp.lt.s32.totalorder %s29_s19, %s29_s19 }
   0xa   :  { %p397_p3 = scmp.ne.s32.totalorder %s29_s19, %s396_s27  ;;  %p402_p5 = scmp.lt.s32.totalorder %s396_s27, %s396_s27 }
   0xc   :  { %p403_p6 = por %p402_p5, %p401_p4 }
   0xe   :  { %p404_p7 = pnand %p403_p6, %p397_p3 }
  0x10   :  { %407 = shalt.err (!%p404_p7)
}
  0x11   :  { %s481_s28 = smov 128   ;;  %s482_s29 = smov 8  }
  0x12   :  { %34 = dma.hbm_to_vmem [thread:$0]  %s580_s1, 512, %s29_s19, [#allocation7], %s481_s28, %s481_s28, %s482_s29  }
  0x13   :  { %s483_s7 = smov [#allocation3]   ;;  %s484_s9 = smov [#allocation8]  }
  0x14   :  { %s19_s8 = sshll.u32 %s483_s7, 4  ;;  %s42_s10 = sshll.u32 %s484_s9, 4  ;;  %s20_s8 = int_to_ptr.vmem [resolvable:$true] %s19_s8  ;;  %s43_s10 = int_to_ptr.vmem [resolvable:$true] %s42_s10 }
  0x15   :  { %s408_s13 = scalar_lea.hbm %s579_s0, 128 }
  0x16   :  { %p409_p8 = scmp.ne.s32.totalorder %s579_s0, %s408_s13  ;;  %p412_p9 = scmp.lt.u32.totalorder %s408_s13, %s579_s0 }
  0x18   :  { %p414_p10 = pnand %p412_p9, %p409_p8 }
  0x1a   :  { %417 = shalt.err (!%p414_p10)
}
  0x1b   :  { %s418_s1 = scalar_lea.vmem %s20_s8, 128  ;;  %p423_p12 = scmp.lt.s32.totalorder %s20_s8, %s20_s8 }
  0x1c   :  { %p419_p11 = scmp.ne.s32.totalorder %s20_s8, %s418_s1  ;;  %p424_p13 = scmp.lt.s32.totalorder %s418_s1, %s418_s1 }
  0x1e   :  { %p425_p0 = por %p424_p13, %p423_p12 }
  0x20   :  { %p426_p1 = pnand %p425_p0, %p419_p11 }
  0x22   :  { %429 = shalt.err (!%p426_p1)
}
  0x23   :  { %22 = dma.hbm_to_vmem [thread:$0]  %s579_s0, 128, %s20_s8, [#allocation4]  }
  0x24   :  { %s430_s22 = scalar_lea.hbm %s582_s3, 2048 }
  0x25   :  { %p431_p2 = scmp.ne.s32.totalorder %s582_s3, %s430_s22  ;;  %p434_p3 = scmp.lt.u32.totalorder %s430_s22, %s582_s3 }
  0x27   :  { %p436_p4 = pnand %p434_p3, %p431_p2 }
  0x29   :  { %439 = shalt.err (!%p436_p4)
}
  0x2a   :  { %s440_s27 = scalar_lea.vmem %s43_s10, 2048  ;;  %p445_p6 = scmp.lt.s32.totalorder %s43_s10, %s43_s10 }
  0x2b   :  { %p441_p5 = scmp.ne.s32.totalorder %s43_s10, %s440_s27  ;;  %p446_p7 = scmp.lt.s32.totalorder %s440_s27, %s440_s27 }
  0x2d   :  { %p447_p8 = por %p446_p7, %p445_p6 }
  0x2f   :  { %p448_p9 = pnand %p447_p8, %p441_p5 }
  0x31   :  { %451 = shalt.err (!%p448_p9)
}
  0x32   :  { %48 = dma.hbm_to_vmem [thread:$0]  %s582_s3, 2048, %s43_s10, [#allocation7], %s481_s28, %s481_s28, %s482_s29  }
  0x33   :  { %474 = dma.done.wait [#allocation4], 128  }
  0x34   :  { %475 = vsyncadd [#allocation4], 4294967168 }
  0x35   :  { %476 = dma.done.wait [#allocation7], 2560  }
  0x36   :  { %477 = vsyncadd [#allocation7], 4294964736  ;;  %v485_v0 = vmov 0.0|0.0   ;;  %vm486_vm0 = vmmov 0   ;;  %v487_v1 = vmov 0.0   ;;  %v66_v2 = vld [vmem:[#allocation6] sm:$0xff] }
  0x37   :  { %345 = vmatprep.subr.bf16.mxu0 %v485_v0  ;;  %307 = vmatprep.mubr.msk.f32.mxu0 %vm486_vm0, %v487_v1  ;;  %v67_v3 = vld [vmem:[#allocation6 + $0x8] sm:$0xff]  ;;  %v68_v4 = vld [vmem:[#allocation6 + $0x10] sm:$0xff]  ;;  %v69_v6 = vld [vmem:[#allocation6 + $0x18] sm:$0xff]  ;;  %vm77_vm1 = vcmask 261120   ;;  %s488_s7 = smov [#allocation9]  }
  0x38   :  { %351 = vmatprep.subr.bf16.mxu1 %v485_v0  ;;  %342 = vmatprep.mubr.msk.f32.mxu1 %vm486_vm0, %v487_v1  ;;  %v346_v5 = vpack.c.bf16 %v67_v3, %v66_v2  ;;  %v157_v7 = vld [vmem:[#allocation8] sm:$0xff]  ;;  %v158_v8 = vld [vmem:[#allocation8 + $0x8] sm:$0xff]  ;;  %v159_v9 = vld [vmem:[#allocation8 + $0x10] sm:$0xff]  ;;  %v349_v11 = vpack.c.bf16 %v69_v6, %v68_v4  ;;  %s264_s8 = sshll.u32 %s488_s7, 4  ;;  %s265_s8 = int_to_ptr.vmem [resolvable:$true] %s264_s8 }
  0x39   :  { %v160_v10 = vld [vmem:[#allocation8 + $0x18] sm:$0xff]  ;;  %v352_v12 = vpack.c.bf16 %v158_v8, %v157_v7  ;;  %v161_v14 = vld [vmem:[#allocation8 + $0x20] sm:$0xff]  ;;  %v162_v15 = vld [vmem:[#allocation8 + $0x28] sm:$0xff]  ;;  %p457_p11 = scmp.lt.s32.totalorder %s265_s8, %s265_s8 }
  0x3a   :  { %347 = vmatpush3.bf16.msra.mxu0 %v346_v5  ;;  %v355_v13 = vpack.c.bf16 %v160_v10, %v159_v9  ;;  %v65_v16 = vld [vmem:[#allocation3] sm:$0xff]  ;;  %v358_v17 = vpack.c.bf16 %v162_v15, %v161_v14  ;;  %v163_v18 = vld [vmem:[#allocation8 + $0x30] sm:$0xff]  ;;  %v165_v21 = vld [vmem:[#allocation8 + $0x40] sm:$0xff] }
  0x3b   :  { %348 = vmatprep.subr.bf16.mxu0 %v485_v0  ;;  %353 = vmatpush3.bf16.msra.mxu1 %v352_v12  ;;  %v164_v19 = vld [vmem:[#allocation8 + $0x38] sm:$0xff]  ;;  %v166_v22 = vld [vmem:[#allocation8 + $0x48] sm:$0xff]  ;;  %v167_v24 = vld [vmem:[#allocation8 + $0x50] sm:$0xff] }
  0x3c   :  { %354 = vmatprep.subr.bf16.mxu1 %v485_v0  ;;  %v361_v20 = vpack.c.bf16 %v164_v19, %v163_v18  ;;  %v364_v23 = vpack.c.bf16 %v166_v22, %v165_v21  ;;  %v168_v25 = vld [vmem:[#allocation8 + $0x58] sm:$0xff]  ;;  %v169_v27 = vld [vmem:[#allocation8 + $0x60] sm:$0xff]  ;;  %v170_v28 = vld [vmem:[#allocation8 + $0x68] sm:$0xff] }
  0x3d   :  { %v367_v26 = vpack.c.bf16 %v168_v25, %v167_v24  ;;  %v370_v29 = vpack.c.bf16 %v170_v28, %v169_v27  ;;  %v171_v30 = vld [vmem:[#allocation8 + $0x70] sm:$0xff]  ;;  %v172_v31 = vld [vmem:[#allocation8 + $0x78] sm:$0xff] }
  0x3e   :  { %350 = vmatpush3.bf16.msra.mxu0 %v349_v11  ;;  %v373_v32 = vpack.c.bf16 %v172_v31, %v171_v30  ;;  %v274_v33 = vld [vmem:[%s581_s2] ss:$0 sm:$0xff]  ;;  %s452_s2 = scalar_lea.vmem %s265_s8, 128 }
  0x3f   :  { %356 = vmatpush3.bf16.msra.mxu1 %v355_v13  ;;  %v276_v42 = vld [vmem:[%s583_s4] ss:$0 sm:$0xff]  ;;  %p453_p10 = scmp.ne.s32.totalorder %s265_s8, %s452_s2  ;;  %p458_p12 = scmp.lt.s32.totalorder %s452_s2, %s452_s2 }
  0x40   :  { %357 = vmatprep.subr.bf16.mxu1 %v485_v0 }
  0x41   :  { %308 = vmatmul.mubr.msk.f32.vlgmr.msra.gmra.mrb[0].mxu0 %vm77_vm1, %v65_v16  ;;  %p459_p13 = por %p458_p12, %p457_p11 }
  0x43   :  { %359 = vmatpush3.bf16.msra.mxu1 %v358_v17  ;;  %p460_p0 = pnand %p459_p13, %p453_p10 }
  0x44   :  { %360 = vmatprep.subr.bf16.mxu1 %v485_v0 }
  0x47   :  { %362 = vmatpush3.bf16.msra.mxu1 %v361_v20 }
  0x48   :  { %363 = vmatprep.subr.bf16.mxu1 %v485_v0 }
  0x4b   :  { %365 = vmatpush3.bf16.msra.mxu1 %v364_v23 }
  0x4c   :  { %366 = vmatprep.subr.bf16.mxu1 %v485_v0 }
  0x4f   :  { %368 = vmatpush3.bf16.msra.mxu1 %v367_v26 }
  0x50   :  { %369 = vmatprep.subr.bf16.mxu1 %v485_v0 }
  0x53   :  { %371 = vmatpush3.bf16.msra.mxu1 %v370_v29 }
  0x54   :  { %372 = vmatprep.subr.bf16.mxu1 %v485_v0 }
  0x57   :  { %374 = vmatpush3.bf16.msra.mxu1 %v373_v32 }
 0x114   :  { %v147_v34 = vpop.f32.mrb[0].mxu0 }
 0x115   :  { %v148_v35 = vadd.f32 %v274_v33, %v147_v34  ;;  %v309_v36 = vpop.f32.mrb[1].mxu0 }
 0x117   :  { %v152_v37 = vmul.f32 0.70710677, %v148_v35  ;;  %v151_v39 = vmul.f32 0.5, %v148_v35 }
 0x119   :  { %384 = verf.f32 %v152_v37 }
 0x123   :  { %v385_v38 = vpop.eup %384 }
 0x124   :  { %v154_v40 = vadd.f32 1.0, %v385_v38 }
 0x126   :  { %v155_v41 = vmul.f32 %v154_v40, %v151_v39 }
 0x128   :  { %343 = vmatmul.mubr.f32.vlgmr.msra.gmra.mrb[0].mxu1 %v155_v41 }
 0x1fb   :  { %v239_v43 = vpop.f32.mrb[0].mxu1 }
 0x1fc   :  { %v256_v44 = vadd.f32 %v276_v42, %v239_v43  ;;  %v344_v45 = vpop.f32.mrb[1].mxu1 }
 0x1fe   :  { %257 = vst [vmem:[#allocation9] sm:$0xff] %v256_v44 }
 0x1ff   :  { %463 = shalt.err (!%p460_p0)
}
 0x200   :  { %s464_s11 = scalar_lea.hbm %s584_s5, 128 }
 0x201   :  { %p465_p1 = scmp.ne.s32.totalorder %s584_s5, %s464_s11  ;;  %p468_p2 = scmp.lt.u32.totalorder %s464_s11, %s584_s5 }
 0x203   :  { %p470_p3 = pnand %p468_p2, %p465_p1 }
 0x205   :  { %473 = shalt.err (!%p470_p3)
}
 0x206   :  { %267 = dma.vmem_to_hbm [thread:$0]  %s265_s8, 128, %s584_s5, [#allocation5]  }
 0x207   :  { %478 = dma.done.wait [#allocation5], 128  }
 0x208   :  { %479 = vsyncadd [#allocation5], 4294967168 }
 0x209   :  { %271 = vsyncpa [#allocation4], 1 }
 0x20a   :  { %272 = vsyncpa [#allocation7], 1 }
 0x20b   :  { %273 = vsyncpa [#allocation5], 1 }

</bundles_post_ra>
